<compile_context>
chip_gen: v5e
topology: v5e:2x2
jax: 0.10.0
libtpu: 0.0.40
codegen_flags: <defaults>
</compile_context>

<pallas_src>
import jax
import jax.numpy as jnp
from jax.experimental import pallas as pl
from jax.experimental.pallas import tpu as pltpu


# --------------------------------------------------------------------------- #
# Pallas kernel
# --------------------------------------------------------------------------- #
def _make_attention_gate_kernel(use_mxu_psi):
    def kernel(g_ref, x_ref, wg_ref, wx_ref, b_ref, wpsi_ref, bpsi_ref, out_ref):
        # Activation tiles (channels on sublanes, spatial on lanes):
        #   g_ref: (1, F_g, T)   x_ref: (1, F_l, T)   out_ref: (1, F_l, T)
        # Folded conv+BN weights, resident in VMEM, dtype matches activations:
        #   wg_ref: (F_int, F_g)   wx_ref: (F_int, F_l)   b_ref: (F_int, 1) f32
        #   wpsi_ref: (1, F_int) [MXU path] or (F_int, 1) [VPU path], f32
        #   bpsi_ref: (1, 1) f32
        g = g_ref[0]                               # (F_g, T), native dtype
        x = x_ref[0]                               # (F_l, T), native dtype

        # 1x1 conv (+ folded BN) == channel-contraction matmul.  Native-dtype
        # operands (bf16 stays bf16 on the MXU), f32 accumulation.
        g1 = jnp.dot(wg_ref[...], g, preferred_element_type=jnp.float32)
        x1 = jnp.dot(wx_ref[...], x, preferred_element_type=jnp.float32)
        psi = jnp.maximum(g1 + x1 + b_ref[...], 0.0)        # (F_int, T) f32

        if use_mxu_psi:
            # Large F_int: keep the projection on the (slack) MXU slot.
            a = jnp.dot(wpsi_ref[...], psi,
                        preferred_element_type=jnp.float32) + bpsi_ref[...]
        else:
            # Small F_int: VPU multiply + sublane reduce, lane-dense result.
            a = jnp.sum(psi * wpsi_ref[...], axis=0, keepdims=True) + bpsi_ref[...]
        a = jax.nn.sigmoid(a)                                # (1, T) f32

        # Gate: x * a, broadcast over channels.  Only the single attention row
        # is cast (cheap); no full-tile upcast of x.
        out_ref[0] = (x * a.astype(x.dtype)).astype(out_ref.dtype)

    return kernel


# --------------------------------------------------------------------------- #
# Hardware / tiling helpers
# --------------------------------------------------------------------------- #
def _physical_vmem_bytes(default=64 * 1024 * 1024):
    """Physical VMEM per core; conservative v7x-sized fallback."""
    try:
        info = pltpu.get_tpu_info()
        v = getattr(info, "vmem_capacity_bytes", None)
        if v:
            return int(v)
    except Exception:
        pass
    return default


def _pad_rows(c, itemsize):
    """Sublane padding for a (C, T) tile of the given element size."""
    m = max(1, 32 // max(1, itemsize))      # 8 rows f32, 16 rows bf16, ...
    return -(-c // m) * m


# --------------------------------------------------------------------------- #
# Wrapper
# --------------------------------------------------------------------------- #
def attention_gate(g_nchw, x_nchw, params, *, tile_hw=None, psi_on_mxu=None):
    """g_nchw: (N, F_g, H, W), x_nchw: (N, F_l, H, W) -> (N, F_l, H, W)."""
    N, F_g, H, W = g_nchw.shape
    Nx, F_l, Hx, Wx = x_nchw.shape
    assert (N, H, W) == (Nx, Hx, Wx)
    F_int = params["wg_t"].shape[0]
    HW = H * W

    g_item = jnp.dtype(g_nchw.dtype).itemsize
    x_item = jnp.dtype(x_nchw.dtype).itemsize
    out_item = x_item

    # NCHW -> (N, C, H*W): contiguous reshape only, no HBM transpose pass.
    g3 = g_nchw.reshape(N, F_g, HW)
    x3 = x_nchw.reshape(N, F_l, HW)

    # Fold the two branch biases into one (they are summed before the ReLU)
    # and cast the matmul weights to the activation dtypes (native MXU path).
    wg = params["wg_t"].astype(g_nchw.dtype)
    wx = params["wx_t"].astype(x_nchw.dtype)
    b_sum = (params["bg"] + params["bx"]).astype(jnp.float32)       # (F_int, 1)
    bpsi = params["bpsi"].astype(jnp.float32)                       # (1, 1)

    if psi_on_mxu is None:
        psi_on_mxu = F_int >= 128
    if psi_on_mxu:
        wpsi = params["wpsi"].astype(jnp.float32).reshape(F_int, 1).T   # (1, F_int)
    else:
        wpsi = params["wpsi"].astype(jnp.float32).reshape(F_int, 1)     # (F_int, 1)

    # ---- VMEM-budget-driven spatial tile --------------------------------- #
    vmem_phys = _physical_vmem_bytes()
    budget = int(0.6 * vmem_phys)           # ~38 MiB on v7x, ~77 MiB on v5e/v6e

    def working_bytes(t):
        # Double-buffered streamed operands + f32 temporaries, per grid step.
        streamed = 2 * t * (_pad_rows(F_g, g_item) * g_item
                            + _pad_rows(F_l, x_item) * x_item
                            + _pad_rows(F_l, out_item) * out_item)
        temps = t * 4 * (2 * _pad_rows(F_int, 4) + _pad_rows(F_l, 4) + 8)
        return streamed + temps

    per_lane = working_bytes(1)
    cap = max(128, (budget // per_lane) // 128 * 128)   # lanes, multiple of 128
    if tile_hw is not None:
        cap = min(cap, max(128, (tile_hw // 128) * 128))

    if HW <= cap:
        t_hw = HW                                        # full extent, lane-dense
        num_t = 1
    else:
        t_hw = cap
        num_t = pl.cdiv(HW, t_hw)                        # masked tail block

    # v7x has 2 TensorCores sharded over "parallel" grid axes: guarantee at
    # least 2 programs whenever the spatial extent allows it.
    if N * num_t < 2 and HW > 128:
        t_half = (((HW + 1) // 2 + 127) // 128) * 128
        t_hw = min(t_half, cap)
        num_t = pl.cdiv(HW, t_hw)

    grid = (N, num_t)

    # ---- Specs / compiler params / cost ----------------------------------- #
    full = lambda shape: pl.BlockSpec(shape, lambda n, t: (0, 0))

    w_bytes = (wg.size * g_item + wx.size * x_item
               + 4 * (b_sum.size + wpsi.size + bpsi.size))
    vmem_limit = working_bytes(t_hw) + int(w_bytes) + (8 << 20)
    vmem_limit = max(vmem_limit, 32 << 20)
    vmem_limit = min(vmem_limit, int(0.85 * vmem_phys))

    cost = pl.CostEstimate(
        flops=int(N * HW * (2 * F_int * (F_g + F_l + 1) + 2 * F_l + F_int)),
        transcendentals=int(N * HW),                     # sigmoid
        bytes_accessed=int(g3.size * g_item + x3.size * x_item
                           + N * F_l * HW * out_item + w_bytes),
    )

    out3 = pl.pallas_call(
        _make_attention_gate_kernel(psi_on_mxu),
        out_shape=jax.ShapeDtypeStruct((N, F_l, HW), x_nchw.dtype),
        grid_spec=pltpu.PrefetchScalarGridSpec(
            num_scalar_prefetch=0,
            grid=grid,
            in_specs=[
                pl.BlockSpec((1, F_g, t_hw), lambda n, t: (n, 0, t)),  # g tile
                pl.BlockSpec((1, F_l, t_hw), lambda n, t: (n, 0, t)),  # x tile
                full((F_int, F_g)),                                    # wg (folded)
                full((F_int, F_l)),                                    # wx (folded)
                full((F_int, 1)),                                      # bg+bx
                full(wpsi.shape),                                      # wpsi
                full((1, 1)),                                          # bpsi
            ],
            out_specs=pl.BlockSpec((1, F_l, t_hw), lambda n, t: (n, 0, t)),
        ),
        compiler_params=pltpu.CompilerParams(
            dimension_semantics=("parallel", "parallel"),
            vmem_limit_bytes=int(vmem_limit)),
        cost_estimate=cost,
    )(g3, x3, wg, wx, b_sum, wpsi, bpsi)

    # (N, F_l, H*W) -> NCHW: free reshape, no transpose.
    return out3.reshape(N, F_l, H, W)


# --------------------------------------------------------------------------- #
# Deterministic parameter construction (conv + eval-mode BN folded together)
# --------------------------------------------------------------------------- #
def _fold_conv_bn(w_t, b, gamma, beta, mean, var, eps=1e-5):
    """1x1 conv (w_t: (Cout, Cin), b: (Cout,)) followed by eval-mode BatchNorm.

    y = ((W x + b) - mean) / sqrt(var + eps) * gamma + beta
      = (W * s) x + ((b - mean) * s + beta),   s = gamma / sqrt(var + eps)
    """
    s = gamma / jnp.sqrt(var + eps)
    w_eff = w_t * s[:, None]
    b_eff = (b - mean) * s + beta
    return w_eff.astype(jnp.float32), b_eff.reshape(-1, 1).astype(jnp.float32)


def make_params(key, F_g, F_l, F_int):
    ks = jax.random.split(key, 12)
    scale = 0.2

    # W_g branch (weights stored in kernel layout: (Cout, Cin))
    wg = scale * jax.random.normal(ks[0], (F_int, F_g), jnp.float32)
    bg = scale * jax.random.normal(ks[1], (F_int,), jnp.float32)
    gg = 1.0 + 0.1 * jax.random.normal(ks[2], (F_int,), jnp.float32)
    tg = 0.1 * jax.random.normal(ks[3], (F_int,), jnp.float32)
    wg_f, bg_f = _fold_conv_bn(wg, bg, gg, tg,
                               jnp.zeros((F_int,)), jnp.ones((F_int,)))

    # W_x branch
    wx = scale * jax.random.normal(ks[4], (F_int, F_l), jnp.float32)
    bx = scale * jax.random.normal(ks[5], (F_int,), jnp.float32)
    gx = 1.0 + 0.1 * jax.random.normal(ks[6], (F_int,), jnp.float32)
    tx = 0.1 * jax.random.normal(ks[7], (F_int,), jnp.float32)
    wx_f, bx_f = _fold_conv_bn(wx, bx, gx, tx,
                               jnp.zeros((F_int,)), jnp.ones((F_int,)))

    # psi branch (F_int -> 1)
    wp = scale * jax.random.normal(ks[8], (1, F_int), jnp.float32)
    bp = scale * jax.random.normal(ks[9], (1,), jnp.float32)
    gp = 1.0 + 0.1 * jax.random.normal(ks[10], (1,), jnp.float32)
    tp = 0.1 * jax.random.normal(ks[11], (1,), jnp.float32)
    wp_f, bp_f = _fold_conv_bn(wp, bp, gp, tp,
                               jnp.zeros((1,)), jnp.ones((1,)))

    return dict(wg_t=wg_f, bg=bg_f,          # (F_int, F_g), (F_int, 1)
                wx_t=wx_f, bx=bx_f,          # (F_int, F_l), (F_int, 1)
                wpsi=wp_f.T, bpsi=bp_f)      # (F_int, 1),  (1, 1)


# --------------------------------------------------------------------------- #
# Pure-JAX reference (same math, NCHW) for correctness checks
# --------------------------------------------------------------------------- #
def attention_gate_ref(g_nchw, x_nchw, p):
    def conv1x1(inp, w_t, b):  # inp: NCHW, w_t: (Cout, Cin)
        return jnp.einsum("nchw,oc->nohw", inp, w_t) + b.reshape(1, -1, 1, 1)

    g1 = conv1x1(g_nchw, p["wg_t"], p["bg"][:, 0])
    x1 = conv1x1(x_nchw, p["wx_t"], p["bx"][:, 0])
    psi = jnp.maximum(g1 + x1, 0.0)
    a = jax.nn.sigmoid(conv1x1(psi, p["wpsi"].T, p["bpsi"][:, 0]))
    return x_nchw * a


# --------------------------------------------------------------------------- #
if __name__ == "__main__":
    key = jax.random.PRNGKey(0)
    k_g, k_x, k_p, k_g2, k_x2, k_p2, k_g4, k_x4, k_p4 = jax.random.split(key, 9)

    # --- Test 1: canonical small shapes (H*W multiple of 128) -------------- #
    N, F_g, F_l, F_int, H, W = 2, 4, 4, 8, 16, 16
    g = jax.random.normal(k_g, (N, F_g, H, W), jnp.float32)
    x = jax.random.normal(k_x, (N, F_l, H, W), jnp.float32)
    params = make_params(k_p, F_g, F_l, F_int)

    out = jax.block_until_ready(attention_gate(g, x, params))
    ref = attention_gate_ref(g, x, params)
    assert out.shape == (N, F_l, H, W)
    assert jnp.allclose(out, ref, atol=1e-4, rtol=1e-4), "mismatch vs reference"

    # --- Test 2: ragged spatial extent (H*W=400, forced 256-tile + tail) --- #
    N2, Fg2, Fl2, Fi2, H2, W2 = 2, 12, 6, 16, 20, 20
    g2 = jax.random.normal(k_g2, (N2, Fg2, H2, W2), jnp.float32)
    x2 = jax.random.normal(k_x2, (N2, Fl2, H2, W2), jnp.float32)
    p2 = make_params(k_p2, Fg2, Fl2, Fi2)
    out2 = jax.block_until_ready(attention_gate(g2, x2, p2, tile_hw=256))
    ref2 = attention_gate_ref(g2, x2, p2)
    assert jnp.allclose(out2, ref2, atol=1e-4, rtol=1e-4), "tail mismatch"

    # --- Test 3: bf16 end-to-end (native bf16 MXU, no full-tile upcasts) --- #
    g_bf, x_bf = g.astype(jnp.bfloat16), x.astype(jnp.bfloat16)
    out_bf = jax.block_until_ready(attention_gate(g_bf, x_bf, params))
    ref_bf = attention_gate_ref(g_bf.astype(jnp.float32),
                                x_bf.astype(jnp.float32), params)
    assert out_bf.dtype == jnp.bfloat16
    assert jnp.allclose(out_bf.astype(jnp.float32), ref_bf,
                        atol=5e-2, rtol=5e-2), "bf16 mismatch"

    # --- Test 4: large F_int -> MXU psi projection + N=1 grid splitting ---- #
    N4, Fg4, Fl4, Fi4, H4, W4 = 1, 8, 8, 128, 16, 16
    g4 = jax.random.normal(k_g4, (N4, Fg4, H4, W4), jnp.float32)
    x4 = jax.random.normal(k_x4, (N4, Fl4, H4, W4), jnp.float32)
    p4 = make_params(k_p4, Fg4, Fl4, Fi4)
    out4 = jax.block_until_ready(attention_gate(g4, x4, p4))
    ref4 = attention_gate_ref(g4, x4, p4)
    assert jnp.allclose(out4, ref4, atol=1e-4, rtol=1e-4), "mxu-psi mismatch"

    print("KERNEL_OK")
</pallas_src>

<mosaic_0001>
module attributes {stable_mosaic.version = 11 : i64} {
  func.func @kernel(%arg0: i32, %arg1: i32, %arg2: memref<1x4x256xf32, #tpu.memory_space<vmem>>, %arg3: memref<1x4x256xf32, #tpu.memory_space<vmem>>, %arg4: memref<8x4xf32, #tpu.memory_space<vmem>>, %arg5: memref<8x4xf32, #tpu.memory_space<vmem>>, %arg6: memref<8x1xf32, #tpu.memory_space<vmem>>, %arg7: memref<8x1xf32, #tpu.memory_space<vmem>>, %arg8: memref<1x1xf32, #tpu.memory_space<vmem>>, %arg9: memref<1x4x256xf32, #tpu.memory_space<vmem>>) attributes {dimension_semantics = [#tpu.dimension_semantics<parallel>, #tpu.dimension_semantics<parallel>], iteration_bounds = array<i64: 2, 1>, scalar_prefetch = 0 : i64, scratch_operands = 0 : i64, tpu.core_type = #tpu.core_type<tc>, window_params = [{transform_indices = @transform_0, window_bounds = array<i64: 1, 4, 256>}, {transform_indices = @transform_1, window_bounds = array<i64: 1, 4, 256>}, {pipeline_mode = #tpu.pipeline_mode<synchronous>, transform_indices = @transform_2, window_bounds = array<i64: 8, 4>}, {pipeline_mode = #tpu.pipeline_mode<synchronous>, transform_indices = @transform_3, window_bounds = array<i64: 8, 4>}, {pipeline_mode = #tpu.pipeline_mode<synchronous>, transform_indices = @transform_4, window_bounds = array<i64: 8, 1>}, {pipeline_mode = #tpu.pipeline_mode<synchronous>, transform_indices = @transform_5, window_bounds = array<i64: 8, 1>}, {pipeline_mode = #tpu.pipeline_mode<synchronous>, transform_indices = @transform_6, window_bounds = array<i64: 1, 1>}, {transform_indices = @transform_7, window_bounds = array<i64: 1, 4, 256>}]} {
    %c0 = arith.constant 0 : index
    %c0_0 = arith.constant 0 : index
    %c0_1 = arith.constant 0 : index
    %0 = vector.load %arg2[%c0, %c0_0, %c0_1] : memref<1x4x256xf32, #tpu.memory_space<vmem>>, vector<1x4x256xf32>
    %1 = vector.shape_cast %0 : vector<1x4x256xf32> to vector<4x256xf32>
    %c0_2 = arith.constant 0 : index
    %c0_3 = arith.constant 0 : index
    %c0_4 = arith.constant 0 : index
    %2 = vector.load %arg3[%c0_2, %c0_3, %c0_4] : memref<1x4x256xf32, #tpu.memory_space<vmem>>, vector<1x4x256xf32>
    %3 = vector.shape_cast %2 : vector<1x4x256xf32> to vector<4x256xf32>
    %c0_5 = arith.constant 0 : index
    %c0_6 = arith.constant 0 : index
    %4 = vector.load %arg4[%c0_5, %c0_6] : memref<8x4xf32, #tpu.memory_space<vmem>>, vector<8x4xf32>
    %cst = arith.constant dense<0.000000e+00> : vector<8x256xf32>
    %5 = tpu.matmul %4, %1, %cst {dimension_numbers = #tpu.dot_dimension_numbers<[1], [0], [0], [1], [0, 0, 1, 1], [], []>} : vector<8x4xf32>, vector<4x256xf32>, vector<8x256xf32> -> vector<8x256xf32>
    %c0_7 = arith.constant 0 : index
    %c0_8 = arith.constant 0 : index
    %6 = vector.load %arg5[%c0_7, %c0_8] : memref<8x4xf32, #tpu.memory_space<vmem>>, vector<8x4xf32>
    %cst_9 = arith.constant dense<0.000000e+00> : vector<8x256xf32>
    %7 = tpu.matmul %6, %3, %cst_9 {dimension_numbers = #tpu.dot_dimension_numbers<[1], [0], [0], [1], [0, 0, 1, 1], [], []>} : vector<8x4xf32>, vector<4x256xf32>, vector<8x256xf32> -> vector<8x256xf32>
    %8 = arith.addf %5, %7 : vector<8x256xf32>
    %c0_10 = arith.constant 0 : index
    %c0_11 = arith.constant 0 : index
    %9 = vector.load %arg6[%c0_10, %c0_11] : memref<8x1xf32, #tpu.memory_space<vmem>>, vector<8x1xf32>
    %10 = vector.broadcast %9 : vector<8x1xf32> to vector<8x256xf32>
    %11 = arith.addf %8, %10 : vector<8x256xf32>
    %cst_12 = arith.constant 0.000000e+00 : f32
    %12 = vector.broadcast %cst_12 : f32 to vector<8x256xf32>
    %13 = arith.maximumf %11, %12 : vector<8x256xf32>
    %c0_13 = arith.constant 0 : index
    %c0_14 = arith.constant 0 : index
    %14 = vector.load %arg7[%c0_13, %c0_14] : memref<8x1xf32, #tpu.memory_space<vmem>>, vector<8x1xf32>
    %15 = vector.broadcast %14 : vector<8x1xf32> to vector<8x256xf32>
    %16 = arith.mulf %13, %15 : vector<8x256xf32>
    %cst_15 = arith.constant dense<0.000000e+00> : vector<256xf32>
    %17 = vector.multi_reduction <add>, %16, %cst_15 [0] : vector<8x256xf32> to vector<256xf32>
    %18 = vector.shape_cast %17 : vector<256xf32> to vector<1x256xf32>
    %c0_16 = arith.constant 0 : index
    %c0_17 = arith.constant 0 : index
    %19 = vector.load %arg8[%c0_16, %c0_17] : memref<1x1xf32, #tpu.memory_space<vmem>>, vector<1x1xf32>
    %20 = vector.broadcast %19 : vector<1x1xf32> to vector<1x256xf32>
    %21 = arith.addf %18, %20 : vector<1x256xf32>
    %22 = arith.negf %21 : vector<1x256xf32>
    %23 = math.exp %22 : vector<1x256xf32>
    %cst_18 = arith.constant 1.000000e+00 : f32
    %24 = vector.broadcast %cst_18 : f32 to vector<1x256xf32>
    %25 = arith.addf %24, %23 : vector<1x256xf32>
    %26 = arith.divf %24, %25 : vector<1x256xf32>
    %27 = vector.broadcast %26 : vector<1x256xf32> to vector<4x256xf32>
    %28 = arith.mulf %3, %27 : vector<4x256xf32>
    %c0_19 = arith.constant 0 : index
    %c0_20 = arith.constant 0 : index
    %c0_21 = arith.constant 0 : index
    %29 = vector.load %arg9[%c0_19, %c0_20, %c0_21] : memref<1x4x256xf32, #tpu.memory_space<vmem>>, vector<1x4x256xf32>
    %30 = vector.shape_cast %29 : vector<1x4x256xf32> to vector<4x256xf32>
    %31 = vector.shape_cast %28 : vector<4x256xf32> to vector<1x4x256xf32>
    tpu.vector_store %arg9[%c0_19, %c0_20, %c0_21], %31 {strides = array<i32>} : memref<1x4x256xf32, #tpu.memory_space<vmem>>, vector<1x4x256xf32>,
    return
  }
  func.func @transform_0(%arg0: i32, %arg1: i32) -> (i32, i32, i32) {
    %c0_i32 = arith.constant 0 : i32
    %c0_i32_0 = arith.constant 0 : i32
    return %arg0, %c0_i32, %arg1 : i32, i32, i32
  }
  func.func @transform_1(%arg0: i32, %arg1: i32) -> (i32, i32, i32) {
    %c0_i32 = arith.constant 0 : i32
    %c0_i32_0 = arith.constant 0 : i32
    return %arg0, %c0_i32, %arg1 : i32, i32, i32
  }
  func.func @transform_2(%arg0: i32, %arg1: i32) -> (i32, i32) {
    %c0_i32 = arith.constant 0 : i32
    %c0_i32_0 = arith.constant 0 : i32
    %c0_i32_1 = arith.constant 0 : i32
    return %c0_i32, %c0_i32_0 : i32, i32
  }
  func.func @transform_3(%arg0: i32, %arg1: i32) -> (i32, i32) {
    %c0_i32 = arith.constant 0 : i32
    %c0_i32_0 = arith.constant 0 : i32
    %c0_i32_1 = arith.constant 0 : i32
    return %c0_i32, %c0_i32_0 : i32, i32
  }
  func.func @transform_4(%arg0: i32, %arg1: i32) -> (i32, i32) {
    %c0_i32 = arith.constant 0 : i32
    %c0_i32_0 = arith.constant 0 : i32
    %c0_i32_1 = arith.constant 0 : i32
    return %c0_i32, %c0_i32_0 : i32, i32
  }
  func.func @transform_5(%arg0: i32, %arg1: i32) -> (i32, i32) {
    %c0_i32 = arith.constant 0 : i32
    %c0_i32_0 = arith.constant 0 : i32
    %c0_i32_1 = arith.constant 0 : i32
    return %c0_i32, %c0_i32_0 : i32, i32
  }
  func.func @transform_6(%arg0: i32, %arg1: i32) -> (i32, i32) {
    %c0_i32 = arith.constant 0 : i32
    %c0_i32_0 = arith.constant 0 : i32
    %c0_i32_1 = arith.constant 0 : i32
    return %c0_i32, %c0_i32_0 : i32, i32
  }
  func.func @transform_7(%arg0: i32, %arg1: i32) -> (i32, i32, i32) {
    %c0_i32 = arith.constant 0 : i32
    %c0_i32_0 = arith.constant 0 : i32
    return %arg0, %c0_i32, %arg1 : i32, i32, i32
  }
}

</mosaic_0001>

<bundles_post_ra>
// kernel: tpu_custom_call.1
= control target key start
LH: loop header
LB: loop body
LE: loop exit
PB: predicated region body
PF: predicated region fallthrough
CT: control target
= control target key end

     0   :  { %s1003_s0 = inlined_call_operand.vmem [shape: f32[2,4,256], index: 0, kind: input, shape index: {}]   ;;  %s1004_s1 = inlined_call_operand.vmem [shape: f32[2,4,256], index: 1, kind: input, shape index: {}]   ;;  %s1005_s2 = inlined_call_operand.vmem [shape: f32[8,4], index: 2, kind: input, shape index: {}]   ;;  %s1006_s3 = inlined_call_operand.vmem [shape: f32[8,4], index: 3, kind: input, shape index: {}]   ;;  %s1007_s4 = inlined_call_operand.vmem [shape: f32[8,1], index: 4, kind: input, shape index: {}]   ;;  %s1008_s5 = inlined_call_operand.vmem [shape: f32[8,1], index: 5, kind: input, shape index: {}]   ;;  %s1009_s6 = inlined_call_operand.<no memory space> [shape: f32[1,1], index: 6, kind: input, shape index: {}]   ;;  %s1010_s7 = inlined_call_operand.hbm [shape: f32[2,4,256], index: 7, kind: output, shape index: {}]  }
   0x1   :  { %v12_v0 = vstv %s1009_s6 }
   0x2   :  { %13 = vst [vmem:[#allocation2] sm:$0x1] %v12_v0 }
   0x3   :  { %14 = vsyncpa [#allocation4], 0 }
   0x4   :  { %16 = vsyncpa [#allocation4 + $0x1], 0  ;;  %s869_s26 = smov 0   ;;  %s871_s27 = smov 0  }
   0x5   :  { %s873_s28 = smov 0   ;;  %s875_s29 = smov 0  }
   0x6   :  { %s877_s30 = smov 0   ;;  %s879_s8 = smov 0  }
   0x7 LB: > { %s651_s6 = sadd.s32 4294967295, %s823_s8   ;;  %s652_s9 = sadd.s32 4294967294, %s823_s8   ;;  %s823_s8 = sphi %s879_s8, %s22_s8   ;;  %s819_s30 = sphi %s877_s30, %s1019_s30   ;;  %s815_s29 = sphi %s875_s29, %s1018_s29   ;;  %s811_s28 = sphi %s873_s28, %s1017_s28   ;;  %s807_s27 = sphi %s871_s27, %s1016_s27   ;;  %s803_s26 = sphi %s869_s26, %s1015_s26  }
   0x8   : > { %s34_s10 = sadd.s32 1, %s819_s30  ;;  %s204_s11 = sadd.s32 1, %s811_s28 }
   0x9   : > { %p36_p0 = scmp.ge.s32.totalorder %s34_s10, 2  ;;  %p214_p1 = scmp.ne.s32.totalorder %s811_s28, %s807_s27 }
   0xa   : > { %p215_p2 = scmp.eq.s32.totalorder %s651_s6, 1  ;;  %p220_p3 = scmp.ne.s32.totalorder %s807_s27, %s803_s26 }
   0xb   : > { %s1021_s10 = smov (%p36_p0, %s34_s10), 0  ;;  %p221_p5 = scmp.eq.s32.totalorder %s652_s9, 1 }
   0xc   : > { %p909_p4 = por %p215_p2, %p214_p1  ;;  %s199_s13 = ssub.s32 %s819_s30, %s1021_s10 }
   0xd   : > { %p655_p6 = scmp.ge.s32.totalorder %s823_s8, 1  ;;  %p202_p7 = scmp.eq.s32.totalorder %s199_s13, 0 }
   0xe   : > { %p916_p8 = por %p221_p5, %p220_p3  ;;  %p280_p9 = scmp.lt.s32.totalorder %s823_s8, 3 }
   0xf   : > { %s922_s15 = scalar_select %p202_p7, %s811_s28, %s204_s11  }
  0x10   : > { %p281_p10 = pnand %p655_p6, %p280_p9 }
  0x11   : > { %p326_p11 = scmp.lt.s32.totalorder (!%p281_p10), %s815_s29, 1  ;;  %s678_s20 = sshll.u32 (!%p281_p10), %s815_s29, 3 }
  0x12   : > { %284 = sbr.rel (%p281_p10) target bundleno = 236 (0xec), region = 48  ;;  %s552_s23 = scalar_lea.hbm (!%p281_p10), %s1010_s7, %s678_s20 }
  0x13   : > { %s556_s25 = sshll.u32 (!%p281_p10), %s552_s23, 4  ;;  %s765_s17 = scalar_lea.hbm (!%p281_p10), %s1010_s7, 16  ;;  %s557_s25 = int_to_ptr.hbm [resolvable:$true] %s556_s25 }
  0x17   : > { %v825_v1 = vmov 0   ;;  %v454_v2 = vld [vmem:[%s1007_s4] sm:$0xff]  ;;  %v484_v3 = vld [vmem:[#allocation2] sm:$0x1]  ;;  %s327_s18 = scalar_select %p326_p11, %s815_s29, 1  ;;  %vm358_vm0 = vcmask 1043456  }
  0x18   : > { %735 = vset.pattern.permute.xlu0 %v825_v1  ;;  %736 = vset.pattern.permute.xlu1 %v825_v1  ;;  %v464_v5 = vld [vmem:[%s1008_s5] sm:$0xff]  ;;  %vm354_vm1 = vcmask 31744  }
  0x19   : > { %457 = vperm.xlu0 %735, %v454_v2   ;;  %487 = vperm.xlu1 %736, %v484_v3   ;;  %s676_s19 = sshll.u32 %s327_s18, 3  ;;  %v349_v7 = vld [vmem:[%s1006_s3] sm:$0xff]  ;;  %s322_s18 = sand.u32 1, %s807_s27  }
  0x1a   : > { %s343_s22 = scalar_lea.vmem %s1004_s1, %s676_s19  ;;  %s333_s9 = scalar_lea.vmem %s1003_s0, %s676_s19  ;;  %v348_v10 = vld [vmem:[%s1005_s2] sm:$0xff] }
  0x1b   : > { %v932_v4 = vld [vmem:[%s343_s22] sm:$0xff]  ;;  %s954_s19 = sshll.u32 %s322_s18, 3  ;;  %s539_s6 = scalar_lea.sflag [#allocation4], %s322_s18 }
  0x1c   : > { %351 = vst [vmem:[#allocation1] ss:$2 sm:$0xff] %v932_v4  ;;  %v346_v6 = vld [vmem:[%s333_s9] sm:$0xff]  ;;  %s324_s29 = scalar_lea.vmem [#allocation3], %s954_s19  ;;  %s759_s9 = sshra.s32 %s557_s25, 4  ;;  %s760_s9 = int_to_ptr.hbm [resolvable:$true] %s759_s9 }
  0x1d   : > { %s554_s24 = sshll.u32 %s324_s29, 4  ;;  %s761_s11 = scalar_lea.hbm %s760_s9, 8  ;;  %s555_s24 = int_to_ptr.vmem [resolvable:$true] %s554_s24 }
  0x1e   : > { %p762_p12 = scmp.ne.s32.totalorder %s760_s9, %s761_s11  ;;  %p766_p1 = scmp.lt.s32.totalorder %s760_s9, %s1010_s7 }
  0x1f   : > { %p767_p2 = scmp.lt.s32.totalorder %s765_s17, %s761_s11 }
  0x20   : > { %p763_p13 = pnand %p762_p12, %p909_p4 }
  0x21   : > { %467 = vperm.xlu0 %735, %v464_v5   ;;  %p768_p3 = por %p767_p2, %p766_p1 }
  0x22   : > { %p764_p0 = pneg %p763_p13 }
  0x23   : > { %v352_v8 = vld.sshfl [vmem:[#allocation1] sm:$0xff pattern:$0x75316420]  ;;  %v353_v9 = vld.sshfl [vmem:[#allocation1 + $0x8] sm:$0xff pattern:$0x75316420] }
  0x24   : > { %404 = vst [vmem:[#allocation1] ss:$2 sm:$0xff] %v346_v6  ;;  %661 = vmatpush.msk.msra.mxu0 %vm358_vm0, %v352_v8  ;;  %663 = vmatpush.msk.msra.mxu1 %vm358_vm0, %v353_v9  ;;  %p769_p5 = pnand %p768_p3, %p764_p0 }
  0x25   : > { %662 = vmatmul.msk.f32.vlgmr.msra.gmra.mxu0 %vm354_vm1, %v349_v7  ;;  %664 = vmatmul.msk.f32.vlgmr.msra.gmra.mxu1 %vm354_vm1, %v349_v7 }
  0x2b   : > { %v405_v11 = vld.sshfl [vmem:[#allocation1] sm:$0xff pattern:$0x75316420]  ;;  %v406_v12 = vld.sshfl [vmem:[#allocation1 + $0x8] sm:$0xff pattern:$0x75316420] }
  0x2c   : > { %665 = vmatpush.msk.msra.mxu2 %vm358_vm0, %v405_v11  ;;  %667 = vmatpush.msk.msra.mxu3 %vm358_vm0, %v406_v12 }
  0x2d   : > { %666 = vmatmul.msk.f32.vlgmr.msra.gmra.mxu2 %vm354_vm1, %v348_v10  ;;  %668 = vmatmul.msk.f32.vlgmr.msra.gmra.mxu3 %vm354_vm1, %v348_v10 }
  0x8b   : > { %v458_v13 = vpop.permute.xlu0 %457  ;;  %v488_v33 = vpop.permute.xlu1 %487 }
  0x8c   : > { %v490_v38 = vperm.slane %v488_v33, 0 }
  0x93   : > { %v468_v24 = vpop.permute.xlu0 %467 }
  0xa2   : > { %v380_v14 = vpop.f32.mrf.mxu0  ;;  %v400_v15 = vpop.f32.mrf.mxu1 }
  0xb0   : > { %v431_v16 = vpop.f32.mrf.mxu2  ;;  %v451_v17 = vpop.f32.mrf.mxu3 }
  0xb1   : > { %v432_v18 = vadd.f32 %v431_v16, %v380_v14  ;;  %v452_v19 = vadd.f32 %v451_v17, %v400_v15 }
  0xb3   : > { %v460_v20 = vadd.f32 %v458_v13, %v432_v18  ;;  %v461_v21 = vadd.f32 %v458_v13, %v452_v19 }
  0xb5   : > { %v462_v22 = vmax.f32 %v460_v20, 0.0  ;;  %v463_v23 = vmax.f32 %v461_v21, 0.0 }
  0xb7   : > { %v470_v25 = vmul.f32 %v468_v24, %v462_v22  ;;  %v471_v26 = vmul.f32 %v468_v24, %v463_v23 }
  0xb9   : > { %v472_v27 = vrot.slane %v470_v25, 4  ;;  %v478_v28 = vrot.slane %v471_v26, 4 }
  0xbb   : > { %v473_v29 = vadd.f32 %v472_v27, %v470_v25  ;;  %v479_v30 = vadd.f32 %v478_v28, %v471_v26 }
  0xbd   : > { %v474_v31 = vrot.slane %v473_v29, 2  ;;  %v480_v32 = vrot.slane %v479_v30, 2 }
  0xbf   : > { %v475_v34 = vadd.f32 %v474_v31, %v473_v29  ;;  %v481_v35 = vadd.f32 %v480_v32, %v479_v30 }
  0xc1   : > { %v476_v36 = vrot.slane %v475_v34, 1  ;;  %v482_v37 = vrot.slane %v481_v35, 1 }
  0xc3   : > { %v477_v39 = vadd.f32 %v476_v36, %v475_v34  ;;  %v483_v40 = vadd.f32 %v482_v37, %v481_v35 }
  0xc5   : > { %v491_v41 = vadd.f32 %v490_v38, %v477_v39  ;;  %v492_v42 = vadd.f32 %v490_v38, %v483_v40 }
  0xc7   : > { %v669_v43 = vmul.f32 -1.442695, %v491_v41  ;;  %v670_v44 = vmul.f32 -1.442695, %v492_v42 }
  0xc9   : > { %737 = vpow2.f32 %v669_v43 }
  0xca   : > { %739 = vpow2.f32 %v670_v44 }
  0xcf   : > { %v738_v45 = vpop.eup %737 }
  0xd0   : > { %v740_v46 = vpop.eup %739  ;;  %v499_v47 = vadd.f32 1.0, %v738_v45 }
  0xd1   : > { %v500_v48 = vadd.f32 1.0, %v740_v46 }
  0xd2   : > { %741 = vrcp.f32 %v499_v47  ;;  %vm506_vm4 = vweird.f32 %v499_v47  ;;  %v512_v60 = vand.u32 2147483648, %v499_v47  ;;  %v510_v62 = vand.u32 2147483647, %v499_v47 }
  0xd3   : > { %743 = vrcp.f32 %v500_v48  ;;  %v527_v56 = vand.u32 2147483648, %v500_v48  ;;  %v525_v58 = vand.u32 2147483647, %v500_v48  ;;  %vm521_vm6 = vweird.f32 %v500_v48 }
  0xd4   : > { %v513_v3 = vor.u32 1.1754944e-38, %v512_v60  ;;  %vm511_vm9 = vcmp.eq.f32.partialorder %v510_v62, 8.507059e+37 }
  0xd5   : > { %v528_v0 = vor.u32 1.1754944e-38, %v527_v56  ;;  %vm526_vm8 = vcmp.eq.f32.partialorder %v525_v58, 8.507059e+37 }
  0xd8   : > { %v742_v49 = vpop.eup %741 }
  0xd9   : > { %v744_v50 = vpop.eup %743  ;;  %v502_v51 = vmul.f32 %v742_v49, %v499_v47  ;;  %vm507_vm2 = vweird.f32 %v742_v49 }
  0xda   : > { %v517_v52 = vmul.f32 %v744_v50, %v500_v48  ;;  %vm522_vm3 = vweird.f32 %v744_v50  ;;  %vm957_vm5 = vmor %vm506_vm4, %vm507_vm2 }
  0xdb   : > { %v503_v53 = vsub.f32 1.0, %v502_v51  ;;  %vm523_vm7 = vmor %vm521_vm6, %vm522_vm3 }
  0xdc   : > { %v518_v54 = vsub.f32 1.0, %v517_v52 }
  0xdd   : > { %v504_v55 = vmul.f32 %v742_v49, %v503_v53 }
  0xde   : > { %v519_v57 = vmul.f32 %v744_v50, %v518_v54 }
  0xdf   : > { %v505_v59 = vadd.f32 %v742_v49, %v504_v55 }
  0xe0   : > { %v520_v63 = vadd.f32 %v744_v50, %v519_v57 }
  0xe1   : > { %v509_v1 = vsel %vm957_vm5, %v742_v49, %v505_v59 }
  0xe2   : > { %v524_v2 = vsel %vm523_vm7, %v744_v50, %v520_v63  ;;  %v514_v7 = vsel %vm511_vm9, %v513_v3, %v509_v1 }
  0xe3   : > { %v529_v5 = vsel %vm526_vm8, %v528_v0, %v524_v2 }
  0xe4   : > { %v533_v6 = vrot.slane %v529_v5, 4 }
  0xe6   : > { %v534_v8 = vsel %vm358_vm0, %v514_v7, %v533_v6 }
  0xe7   : > { %v536_v9 = vmul.f32 %v534_v8, %v932_v4 }
  0xe9   : > { %537 = vst [vmem:[%s324_s29] sm:$0xff] %v536_v9 }
  0xea   : > { %772 = shalt.err (!%p769_p5)
}
  0xeb   : > { %679 = dma.vmem_to_hbm [thread:$0]  (%p909_p4), %s555_s24, 128, %s557_s25, %s539_s6  }
  0xec PF: > { %p685_p6 = scmp.ge.s32.totalorder %s823_s8, 2  ;;  %s568_s18 = sand.u32 1, %s803_s26  }
  0xed   : > { %s569_s21 = scalar_lea.sflag [#allocation4], %s568_s18 }
  0xee   : > { %p682_p7 = pnand %p685_p6, %p916_p8 }
  0xf0   : > { %p683_p9 = pneg %p682_p7 }
  0xf2   : > { %798 = dma.done.wait (%p683_p9), %s569_s21, 128  }
  0xf3   : > { %800 = vsyncadd (%p683_p9), %s569_s21, 4294967168  ;;  %s22_s8 = sadd.s32 1, %s823_s8   ;;  %s1015_s26 = smov %s807_s27 }
  0xf4   : > { %p19_p10 = scmp.ge.s32.totalorder %s22_s8, 4   ;;  %s1016_s27 = smov %s811_s28 }
  0xf5   : > { %s1017_s28 = smov %s922_s15  ;;  %s1018_s29 = smov %s819_s30 }
  0xf6   : > { %s1019_s30 = smov %s1021_s10  ;;  %21 = sbr.rel (!%p19_p10) target bundleno = 7 (0x7), region = 86 }
  0xfb   :  { %575 = vsyncpa [#allocation4], 1 }
  0xfc   :  { %577 = vsyncpa [#allocation4 + $0x1], 1 }

</bundles_post_ra>
